<compile_context>
chip_gen: v7x
topology: tpu7x:2x2x1
jax: 0.10.0
libtpu: 0.0.40
codegen_flags: <defaults>
</compile_context>

<pallas_src>
import jax
import jax.numpy as jnp
from jax.experimental import pallas as pl
from jax.experimental.pallas import tpu as pltpu

NEG_MASK = -1e9    # additive logit bias for non-edges (finite; self-loops guarantee >=1 edge/row)
NEG_INIT = -1e30   # initial running max for the online softmax


# --------------------- pass 1: per-node projection + attention coefficients ---------------------

def make_proj_kernel(heads, out_ch):
    def kernel(x_ref, w_ref, asrc_ref, adst_ref, haug_ref, adst_out_ref, asrc_out_ref):
        # bf16 MXU operands, f32 accumulation; softmax statistics stay f32 downstream.
        x = x_ref[...].astype(jnp.bfloat16)                         # [t, F_in]
        w = w_ref[...].astype(jnp.bfloat16)                         # [F_in, H*C]
        h = jnp.dot(x, w, preferred_element_type=jnp.float32)       # [t, H*C] f32
        h_bf = h.astype(jnp.bfloat16)

        # All heads' attention projections via block-diagonal packed weights (one matmul each).
        a_dst = jnp.dot(h_bf, adst_ref[...].astype(jnp.bfloat16),
                        preferred_element_type=jnp.float32)         # [t, H]
        a_src = jnp.dot(h_bf, asrc_ref[...].astype(jnp.bfloat16),
                        preferred_element_type=jnp.float32)         # [t, H]
        adst_out_ref[...] = a_dst
        asrc_out_ref[...] = a_src

        # h augmented with a ones column per head: pass 2's p @ [h | 1] then produces both the
        # feature aggregation and sum(p) in one MXU op (review item: fold row-sum into MXU).
        t = x_ref.shape[0]
        for hd in range(heads):                                     # static unroll (heads <= 2)
            base = hd * (out_ch + 1)
            haug_ref[:, base:base + out_ch] = h_bf[:, hd * out_ch:(hd + 1) * out_ch]
            haug_ref[:, base + out_ch:base + out_ch + 1] = jnp.ones((t, 1), jnp.bfloat16)
    return kernel


# ---------------- pass 2: tiled attention + aggregation with online softmax ----------------

def make_attn_kernel(heads, out_ch, concat, apply_elu, negative_slope=0.2):
    cw = out_ch + 1   # per-head width in the augmented feature / accumulator layout

    def kernel(nz_idx_ref, nz_cnt_ref, adst_ref, asrct_ref, haug_ref, adj_ref, bias_ref,
               out_ref, m_sc, acc_sc):
        i = pl.program_id(0)
        k = pl.program_id(1)

        @pl.when(k == 0)
        def _init():
            m_sc[...] = jnp.full(m_sc.shape, NEG_INIT, jnp.float32)
            acc_sc[...] = jnp.zeros(acc_sc.shape, jnp.float32)

        # Block-sparsity skip: steps past this dst tile's non-empty src-tile count are padding
        # (their index_map repeats the last valid tile -> no new DMA) and do no compute.
        @pl.when(k < nz_cnt_ref[i])
        def _tile():
            edge = adj_ref[...] > 0        # [td, ts] bool, hoisted once, shared by all heads
            h_src = haug_ref[...]          # [ts, H*(C+1)] bf16 (per head: C features + ones col)
            adst = adst_ref[...]           # [td, H] f32
            asrct = asrct_ref[...]         # [H, ts] f32

            for hd in range(heads):        # static unroll (heads is 1 or 2)
                sl = slice(hd * cw, (hd + 1) * cw)

                # e[i, j] = LeakyReLU(alpha_dst[i] + alpha_src[j]), masked to -1e9 on non-edges.
                s = adst[:, hd:hd + 1] + asrct[hd:hd + 1, :]                     # [td, ts]
                s = jnp.where(s > 0, s, negative_slope * s)
                s = jnp.where(edge, s, NEG_MASK)

                # online (flash-style) softmax update; garbage from fully-masked rows is wiped
                # exactly (exp(-1e9) == 0) once a real tile is seen — self-loops guarantee every
                # dst row has at least one real entry in some visited tile.
                m_old = m_sc[hd]                                                 # [td, 1]
                m_new = jnp.maximum(m_old, jnp.max(s, axis=-1, keepdims=True))
                rescale = jnp.exp(m_old - m_new)
                p = jnp.exp(s - m_new)                                           # [td, ts]
                m_sc[hd] = m_new
                # p @ [h_head | 1]: last column accumulates sum(p) -> running softmax denominator.
                acc_sc[:, sl] = rescale * acc_sc[:, sl] + jnp.dot(
                    p.astype(jnp.bfloat16), h_src[:, sl],
                    preferred_element_type=jnp.float32)                          # [td, C+1]

        @pl.when(k == pl.num_programs(1) - 1)
        def _finalize():
            bias = bias_ref[...].astype(jnp.float32)                             # [1, d_out]
            if concat:
                for hd in range(heads):
                    base = hd * cw
                    # deferred normalization (exact reciprocal: runs once per dst tile).
                    inv = pl.reciprocal(acc_sc[:, base + out_ch:base + out_ch + 1], approx=False)
                    val = acc_sc[:, base:base + out_ch] * inv \
                        + bias[:, hd * out_ch:(hd + 1) * out_ch]
                    if apply_elu:
                        val = jnp.where(val > 0, val, jnp.exp(jnp.minimum(val, 0.0)) - 1.0)
                    out_ref[:, hd * out_ch:(hd + 1) * out_ch] = val.astype(out_ref.dtype)
            else:
                total = acc_sc[:, 0:out_ch] * pl.reciprocal(
                    acc_sc[:, out_ch:out_ch + 1], approx=False)
                for hd in range(1, heads):
                    base = hd * cw
                    total = total + acc_sc[:, base:base + out_ch] * pl.reciprocal(
                        acc_sc[:, base + out_ch:base + out_ch + 1], approx=False)
                val = total * (1.0 / heads) + bias
                if apply_elu:
                    val = jnp.where(val > 0, val, jnp.exp(jnp.minimum(val, 0.0)) - 1.0)
                out_ref[...] = val.astype(out_ref.dtype)

    return kernel


# --------------------------------------- layer wrapper ---------------------------------------

def gat_conv(x, w, att_src, att_dst_t, bias, adj_i8, *, heads, out_ch, concat, apply_elu,
             tile_dst=128, tile_src=512, tile_proj=1024):
    n, f_in = x.shape
    hc = heads * out_ch
    hcw = heads * (out_ch + 1)           # augmented width (per head: C features + 1 ones col)
    d_out = hc if concat else out_ch

    t_dst = min(tile_dst, n)
    t_src = min(tile_src, n)
    t_proj = min(tile_proj, n)
    assert n % t_dst == 0 and n % t_src == 0 and n % t_proj == 0, \
        "node count must be a multiple of the tile sizes"

    # Pack per-head attention vectors into block-diagonal [H*C, H] matrices so one MXU
    # matmul produces all heads' alpha_src / alpha_dst.
    a_src_pack = jnp.zeros((hc, heads), jnp.float32)
    a_dst_pack = jnp.zeros((hc, heads), jnp.float32)
    for hd in range(heads):
        a_src_pack = a_src_pack.at[hd * out_ch:(hd + 1) * out_ch, hd].set(att_src[hd])
        a_dst_pack = a_dst_pack.at[hd * out_ch:(hd + 1) * out_ch, hd].set(att_dst_t[:, hd])

    # ---- pass 1: projection + attention coefficients (large row tiles -> near-zero overhead) ----
    h_aug, a_dst, a_src = pl.pallas_call(
        make_proj_kernel(heads, out_ch),
        out_shape=(jax.ShapeDtypeStruct((n, hcw), jnp.bfloat16),
                   jax.ShapeDtypeStruct((n, heads), jnp.float32),
                   jax.ShapeDtypeStruct((n, heads), jnp.float32)),
        grid=(n // t_proj,),
        in_specs=[pl.BlockSpec((t_proj, f_in), lambda i: (i, 0)),
                  pl.BlockSpec((f_in, hc), lambda i: (0, 0)),
                  pl.BlockSpec((hc, heads), lambda i: (0, 0)),
                  pl.BlockSpec((hc, heads), lambda i: (0, 0))],
        out_specs=(pl.BlockSpec((t_proj, hcw), lambda i: (i, 0)),
                   pl.BlockSpec((t_proj, heads), lambda i: (i, 0)),
                   pl.BlockSpec((t_proj, heads), lambda i: (i, 0))),
        compiler_params=pltpu.CompilerParams(dimension_semantics=("parallel",)),
    )(x, w, a_src_pack, a_dst_pack)

    # alpha_src transposed to [H, N] in plain JAX (tiny) so the attention kernel gets a lane row
    # that broadcasts across dst sublanes without any transpose inside the O(N^2) loop.
    a_src_t = jnp.transpose(a_src)

    # ---- adjacency block sparsity: per dst tile, the list of src tiles containing edges ----
    nd, ns = n // t_dst, n // t_src
    tile_has = jnp.any(adj_i8.reshape(nd, t_dst, ns, t_src) > 0, axis=(1, 3))    # [nd, ns]
    nz_cnt = jnp.sum(tile_has, axis=1).astype(jnp.int32)                         # [nd]
    max_k = max(int(jnp.max(nz_cnt)), 1)                                         # static grid extent
    order = jnp.argsort(jnp.where(tile_has, 0, 1), axis=1)[:, :max_k].astype(jnp.int32)
    last = jnp.take_along_axis(order, jnp.maximum(nz_cnt - 1, 0)[:, None], axis=1)
    ks = jnp.arange(max_k, dtype=jnp.int32)[None, :]
    nz_idx = jnp.where(ks < nz_cnt[:, None], order, last).astype(jnp.int32)      # pad w/ last valid

    # ---- pass 2: tiled attention + aggregation (dst tiles parallel, non-empty src tiles only) ----
    kernel = make_attn_kernel(heads, out_ch, concat, apply_elu)
    out = pl.pallas_call(
        kernel,
        out_shape=jax.ShapeDtypeStruct((n, d_out), jnp.float32),
        grid_spec=pltpu.PrefetchScalarGridSpec(
            num_scalar_prefetch=2,
            grid=(nd, max_k),
            in_specs=[pl.BlockSpec((t_dst, heads), lambda i, k, nzi, nzc: (i, 0)),      # alpha_dst
                      pl.BlockSpec((heads, t_src), lambda i, k, nzi, nzc: (0, nzi[i, k])),  # alpha_src^T
                      pl.BlockSpec((t_src, hcw), lambda i, k, nzi, nzc: (nzi[i, k], 0)),    # [h | 1]
                      pl.BlockSpec((t_dst, t_src), lambda i, k, nzi, nzc: (i, nzi[i, k])),  # adj int8
                      pl.BlockSpec((1, d_out), lambda i, k, nzi, nzc: (0, 0))],             # bias
            out_specs=pl.BlockSpec((t_dst, d_out), lambda i, k, nzi, nzc: (i, 0)),
            scratch_shapes=[pltpu.VMEM((heads, t_dst, 1), jnp.float32),   # running max m
                            pltpu.VMEM((t_dst, hcw), jnp.float32)]),      # unnormalized acc + denom
        compiler_params=pltpu.CompilerParams(
            dimension_semantics=("parallel", "arbitrary"),
            vmem_limit_bytes=32 << 20),   # raise v5e's 16 MiB scoped default for the larger src tile
    )(nz_idx, nz_cnt, a_dst, a_src_t, h_aug, adj_i8, bias)
    return out


def gat_model_forward(x, adj_i8, params):
    """Full GATModel forward (eval mode): returns (conv2_output, post-ELU hidden features)."""
    p1, p2 = params["conv1"], params["conv2"]
    x1 = gat_conv(x, p1["w"], p1["att_src"], p1["att_dst_t"], p1["bias"], adj_i8,
                  heads=p1["heads"], out_ch=p1["out_ch"], concat=True, apply_elu=True)
    out = gat_conv(x1, p2["w"], p2["att_src"], p2["att_dst_t"], p2["bias"], adj_i8,
                   heads=p2["heads"], out_ch=p2["out_ch"], concat=False, apply_elu=False)
    return out, x1


# ---------------- plain-JAX f32 reference (same dense math) for a sanity check ----------------

def _ref_gat_conv(x, w, att_src, att_dst_t, bias, adj, heads, out_ch, concat, apply_elu,
                  negative_slope=0.2):
    h = x @ w
    mask = adj > 0
    outs = []
    for hd in range(heads):
        h_hd = h[:, hd * out_ch:(hd + 1) * out_ch]
        a_src = h_hd @ att_src[hd]
        a_dst = h_hd @ att_dst_t[:, hd]
        e = a_dst[:, None] + a_src[None, :]
        e = jnp.where(e > 0, e, negative_slope * e)
        e = jnp.where(mask, e, -jnp.inf)
        attn = jax.nn.softmax(e, axis=-1)
        outs.append(attn @ h_hd)
    out = jnp.concatenate(outs, axis=-1) if concat else sum(outs) / heads
    out = out + bias
    if apply_elu:
        out = jnp.where(out > 0, out, jnp.exp(jnp.minimum(out, 0.0)) - 1.0)
    return out


def _ref_forward(x, adj, params):
    p1, p2 = params["conv1"], params["conv2"]
    x1 = _ref_gat_conv(x, p1["w"], p1["att_src"], p1["att_dst_t"], p1["bias"], adj,
                       p1["heads"], p1["out_ch"], True, True)
    out = _ref_gat_conv(x1, p2["w"], p2["att_src"], p2["att_dst_t"], p2["bias"], adj,
                        p2["heads"], p2["out_ch"], False, False)
    return out, x1


# --------------------------------------------- main ---------------------------------------------

if __name__ == "__main__":
    N = 256                # nodes (2 dst tiles at t_dst=128, exercises init/finalize + megacore axis)
    IN_CH = 8
    HIDDEN = 8
    OUT_CH = 4
    HEADS = 2

    key = jax.random.PRNGKey(0)
    k_x, k_w1, k_a1s, k_a1d, k_b1, k_w2, k_a2s, k_a2d, k_b2 = jax.random.split(key, 9)

    # node features
    x = jax.random.normal(k_x, (N, IN_CH), dtype=jnp.float32)

    # edge_index: bidirectional ring graph (row 0 = src, row 1 = dst)
    src = jnp.concatenate([jnp.arange(N), (jnp.arange(N) + 1) % N])
    dst = jnp.concatenate([(jnp.arange(N) + 1) % N, jnp.arange(N)])

    # dense adjacency as int8 (adj[dst, src] = 1) with self loops (GATConv default)
    adj = jnp.zeros((N, N), jnp.int8).at[dst, src].set(1)
    adj = adj.at[jnp.arange(N), jnp.arange(N)].set(1)

    params = {
        "conv1": {
            "heads": HEADS, "out_ch": HIDDEN,
            "w": jax.random.normal(k_w1, (IN_CH, HEADS * HIDDEN), jnp.float32) * 0.3,
            "att_src": jax.random.normal(k_a1s, (HEADS, HIDDEN), jnp.float32) * 0.3,
            "att_dst_t": jax.random.normal(k_a1d, (HIDDEN, HEADS), jnp.float32) * 0.3,
            "bias": jax.random.normal(k_b1, (1, HEADS * HIDDEN), jnp.float32) * 0.1,
        },
        "conv2": {
            "heads": 1, "out_ch": OUT_CH,
            "w": jax.random.normal(k_w2, (HEADS * HIDDEN, OUT_CH), jnp.float32) * 0.3,
            "att_src": jax.random.normal(k_a2s, (1, OUT_CH), jnp.float32) * 0.3,
            "att_dst_t": jax.random.normal(k_a2d, (OUT_CH, 1), jnp.float32) * 0.3,
            "bias": jax.random.normal(k_b2, (1, OUT_CH), jnp.float32) * 0.1,
        },
    }

    out, hidden = jax.block_until_ready(gat_model_forward(x, adj, params))
    ref_out, ref_hidden = _ref_forward(x, adj.astype(jnp.float32), params)

    assert out.shape == (N, OUT_CH) and hidden.shape == (N, HEADS * HIDDEN)
    # bf16 MXU operands vs the pure-f32 reference -> loosened tolerance; softmax statistics and
    # accumulation stay f32 in the kernel and the finalize reciprocal is exact.
    assert jnp.allclose(hidden, ref_hidden, atol=1e-1, rtol=1e-1), \
        float(jnp.max(jnp.abs(hidden - ref_hidden)))
    assert jnp.allclose(out, ref_out, atol=1e-1, rtol=1e-1), \
        float(jnp.max(jnp.abs(out - ref_out)))

    print("KERNEL_OK")
</pallas_src>

<mosaic_0001>
module attributes {stable_mosaic.version = 11 : i64} {
  func.func @kernel(%arg0: i32, %arg1: memref<256x8xf32, #tpu.memory_space<vmem>>, %arg2: memref<8x16xf32, #tpu.memory_space<vmem>>, %arg3: memref<16x2xf32, #tpu.memory_space<vmem>>, %arg4: memref<16x2xf32, #tpu.memory_space<vmem>>, %arg5: memref<256x18xbf16, #tpu.memory_space<vmem>>, %arg6: memref<256x2xf32, #tpu.memory_space<vmem>>, %arg7: memref<256x2xf32, #tpu.memory_space<vmem>>) attributes {dimension_semantics = [#tpu.dimension_semantics<parallel>], iteration_bounds = array<i64: 1>, scalar_prefetch = 0 : i64, scratch_operands = 0 : i64, tpu.core_type = #tpu.core_type<tc>, window_params = [{transform_indices = @transform_0, window_bounds = array<i64: 256, 8>}, {pipeline_mode = #tpu.pipeline_mode<synchronous>, transform_indices = @transform_1, window_bounds = array<i64: 8, 16>}, {pipeline_mode = #tpu.pipeline_mode<synchronous>, transform_indices = @transform_2, window_bounds = array<i64: 16, 2>}, {pipeline_mode = #tpu.pipeline_mode<synchronous>, transform_indices = @transform_3, window_bounds = array<i64: 16, 2>}, {transform_indices = @transform_4, window_bounds = array<i64: 256, 18>}, {transform_indices = @transform_5, window_bounds = array<i64: 256, 2>}, {transform_indices = @transform_6, window_bounds = array<i64: 256, 2>}]} {
    %c0 = arith.constant 0 : index
    %c0_0 = arith.constant 0 : index
    %0 = vector.load %arg1[%c0, %c0_0] : memref<256x8xf32, #tpu.memory_space<vmem>>, vector<256x8xf32>
    %1 = arith.truncf %0 : vector<256x8xf32> to vector<256x8xbf16>
    %c0_1 = arith.constant 0 : index
    %c0_2 = arith.constant 0 : index
    %2 = vector.load %arg2[%c0_1, %c0_2] : memref<8x16xf32, #tpu.memory_space<vmem>>, vector<8x16xf32>
    %3 = arith.truncf %2 : vector<8x16xf32> to vector<8x16xbf16>
    %cst = arith.constant dense<0.000000e+00> : vector<256x16xf32>
    %4 = tpu.matmul %1, %3, %cst {dimension_numbers = #tpu.dot_dimension_numbers<[1], [0], [0], [1], [0, 0, 1, 1], [], []>} : vector<256x8xbf16>, vector<8x16xbf16>, vector<256x16xf32> -> vector<256x16xf32>
    %5 = arith.truncf %4 : vector<256x16xf32> to vector<256x16xbf16>
    %c0_3 = arith.constant 0 : index
    %c0_4 = arith.constant 0 : index
    %6 = vector.load %arg4[%c0_3, %c0_4] : memref<16x2xf32, #tpu.memory_space<vmem>>, vector<16x2xf32>
    %7 = arith.truncf %6 : vector<16x2xf32> to vector<16x2xbf16>
    %cst_5 = arith.constant dense<0.000000e+00> : vector<256x2xf32>
    %8 = tpu.matmul %5, %7, %cst_5 {dimension_numbers = #tpu.dot_dimension_numbers<[1], [0], [0], [1], [0, 0, 1, 1], [], []>} : vector<256x16xbf16>, vector<16x2xbf16>, vector<256x2xf32> -> vector<256x2xf32>
    %c0_6 = arith.constant 0 : index
    %c0_7 = arith.constant 0 : index
    %9 = vector.load %arg3[%c0_6, %c0_7] : memref<16x2xf32, #tpu.memory_space<vmem>>, vector<16x2xf32>
    %10 = arith.truncf %9 : vector<16x2xf32> to vector<16x2xbf16>
    %cst_8 = arith.constant dense<0.000000e+00> : vector<256x2xf32>
    %11 = tpu.matmul %5, %10, %cst_8 {dimension_numbers = #tpu.dot_dimension_numbers<[1], [0], [0], [1], [0, 0, 1, 1], [], []>} : vector<256x16xbf16>, vector<16x2xbf16>, vector<256x2xf32> -> vector<256x2xf32>
    %c0_9 = arith.constant 0 : index
    %c0_10 = arith.constant 0 : index
    %12 = vector.load %arg6[%c0_9, %c0_10] : memref<256x2xf32, #tpu.memory_space<vmem>>, vector<256x2xf32>
    tpu.vector_store %arg6[%c0_9, %c0_10], %8 {strides = array<i32>} : memref<256x2xf32, #tpu.memory_space<vmem>>, vector<256x2xf32>,
    %c0_11 = arith.constant 0 : index
    %c0_12 = arith.constant 0 : index
    %13 = vector.load %arg7[%c0_11, %c0_12] : memref<256x2xf32, #tpu.memory_space<vmem>>, vector<256x2xf32>
    tpu.vector_store %arg7[%c0_11, %c0_12], %11 {strides = array<i32>} : memref<256x2xf32, #tpu.memory_space<vmem>>, vector<256x2xf32>,
    %14 = vector.extract_strided_slice %5 {offsets = [0, 0], sizes = [256, 8], strides = [1, 1]} : vector<256x16xbf16> to vector<256x8xbf16>
    %c0_13 = arith.constant 0 : index
    %c0_14 = arith.constant 0 : index
    %15 = vector.load %arg5[%c0_13, %c0_14] : memref<256x18xbf16, #tpu.memory_space<vmem>>, vector<256x8xbf16>
    tpu.vector_store %arg5[%c0_13, %c0_14], %14 {strides = array<i32>} : memref<256x18xbf16, #tpu.memory_space<vmem>>, vector<256x8xbf16>,
    %cst_15 = arith.constant 1.000000e+00 : bf16
    %16 = vector.broadcast %cst_15 : bf16 to vector<256x1xbf16>
    %c0_16 = arith.constant 0 : index
    %c8 = arith.constant 8 : index
    %17 = vector.load %arg5[%c0_16, %c8] : memref<256x18xbf16, #tpu.memory_space<vmem>>, vector<256x1xbf16>
    tpu.vector_store %arg5[%c0_16, %c8], %16 {strides = array<i32>} : memref<256x18xbf16, #tpu.memory_space<vmem>>, vector<256x1xbf16>,
    %18 = vector.extract_strided_slice %5 {offsets = [0, 8], sizes = [256, 8], strides = [1, 1]} : vector<256x16xbf16> to vector<256x8xbf16>
    %c0_17 = arith.constant 0 : index
    %c9 = arith.constant 9 : index
    %19 = vector.load %arg5[%c0_17, %c9] : memref<256x18xbf16, #tpu.memory_space<vmem>>, vector<256x8xbf16>
    tpu.vector_store %arg5[%c0_17, %c9], %18 {strides = array<i32>} : memref<256x18xbf16, #tpu.memory_space<vmem>>, vector<256x8xbf16>,
    %cst_18 = arith.constant 1.000000e+00 : bf16
    %20 = vector.broadcast %cst_18 : bf16 to vector<256x1xbf16>
    %c0_19 = arith.constant 0 : index
    %c17 = arith.constant 17 : index
    %21 = vector.load %arg5[%c0_19, %c17] : memref<256x18xbf16, #tpu.memory_space<vmem>>, vector<256x1xbf16>
    tpu.vector_store %arg5[%c0_19, %c17], %20 {strides = array<i32>} : memref<256x18xbf16, #tpu.memory_space<vmem>>, vector<256x1xbf16>,
    return
  }
  func.func @transform_0(%arg0: i32) -> (i32, i32) {
    %c0_i32 = arith.constant 0 : i32
    %c0_i32_0 = arith.constant 0 : i32
    return %arg0, %c0_i32 : i32, i32
  }
  func.func @transform_1(%arg0: i32) -> (i32, i32) {
    %c0_i32 = arith.constant 0 : i32
    %c0_i32_0 = arith.constant 0 : i32
    %c0_i32_1 = arith.constant 0 : i32
    return %c0_i32, %c0_i32_0 : i32, i32
  }
  func.func @transform_2(%arg0: i32) -> (i32, i32) {
    %c0_i32 = arith.constant 0 : i32
    %c0_i32_0 = arith.constant 0 : i32
    %c0_i32_1 = arith.constant 0 : i32
    return %c0_i32, %c0_i32_0 : i32, i32
  }
  func.func @transform_3(%arg0: i32) -> (i32, i32) {
    %c0_i32 = arith.constant 0 : i32
    %c0_i32_0 = arith.constant 0 : i32
    %c0_i32_1 = arith.constant 0 : i32
    return %c0_i32, %c0_i32_0 : i32, i32
  }
  func.func @transform_4(%arg0: i32) -> (i32, i32) {
    %c0_i32 = arith.constant 0 : i32
    %c0_i32_0 = arith.constant 0 : i32
    return %arg0, %c0_i32 : i32, i32
  }
  func.func @transform_5(%arg0: i32) -> (i32, i32) {
    %c0_i32 = arith.constant 0 : i32
    %c0_i32_0 = arith.constant 0 : i32
    return %arg0, %c0_i32 : i32, i32
  }
  func.func @transform_6(%arg0: i32) -> (i32, i32) {
    %c0_i32 = arith.constant 0 : i32
    %c0_i32_0 = arith.constant 0 : i32
    return %arg0, %c0_i32 : i32, i32
  }
}

</mosaic_0001>

<bundles_post_ra>
// kernel: tpu_custom_call.1
= control target key start
LH: loop header
LB: loop body
LE: loop exit
PB: predicated region body
PF: predicated region fallthrough
CT: control target
= control target key end

     0   :  { %vm121_vm0 = vcmask 1043456   ;;  %vm72_vm1 = vcmask 64512   ;;  %vm856_vm2 = vcmask 60416   ;;  %vm889_vm3 = vcmask 68672   ;;  %s2507_s1 = inlined_call_operand.vmem [shape: f32[8,16], index: 1, kind: input, shape index: {}]   ;;  %s2508_s0 = inlined_call_operand.vmem [shape: f32[256,8], index: 0, kind: input, shape index: {}]   ;;  %s2509_s3 = inlined_call_operand.vmem [shape: f32[16,2], index: 3, kind: input, shape index: {}]   ;;  %s2510_s2 = inlined_call_operand.vmem [shape: f32[16,2], index: 2, kind: input, shape index: {}]   ;;  %s2511_s4 = inlined_call_operand.vmem [shape: bf16[256,18], index: 4, kind: output, shape index: {0}]   ;;  %s2512_s5 = inlined_call_operand.vmem [shape: f32[256,2], index: 5, kind: output, shape index: {1}]   ;;  %s2513_s6 = inlined_call_operand.vmem [shape: f32[256,2], index: 6, kind: output, shape index: {2}]  }
   0x1   :  { %v70_v0 = vld [vmem:[%s2507_s1] sm:$0xff]  ;;  %v23_v2 = vld [vmem:[%s2508_s0 + $0x8] sm:$0xff]  ;;  %v24_v7 = vld [vmem:[%s2508_s0 + $0x10] sm:$0xff]  ;;  %vm305_vm4 = vcmask 130048   ;;  %vm1018_vm5 = vcmask 134216   ;;  %vm1051_vm6 = vcmask 142472  }
   0x2   :  { %v22_v1 = vld [vmem:[%s2508_s0] sm:$0xff]  ;;  %v71_v3 = vpack.c.bf16 %v70_v0, %v70_v0  ;;  %v39_v6 = vld [vmem:[%s2508_s0 + $0x88] sm:$0xff]  ;;  %v25_v9 = vld [vmem:[%s2508_s0 + $0x18] sm:$0xff]  ;;  %vm679_vm7 = vcmask 15360  }
   0x3   :  { %v54_v4 = vpack.c.bf16 %v23_v2, %v22_v1  ;;  %v38_v5 = vld [vmem:[%s2508_s0 + $0x80] sm:$0xff]  ;;  %v40_v10 = vld [vmem:[%s2508_s0 + $0x90] sm:$0xff]  ;;  %v41_v11 = vld [vmem:[%s2508_s0 + $0x98] sm:$0xff]  ;;  %v55_v13 = vpack.c.bf16 %v25_v9, %v24_v7 }
   0x4   :  { %v62_v8 = vpack.c.bf16 %v39_v6, %v38_v5  ;;  %1363 = vmatprep.subr.msk.bf16.mxu0 %vm121_vm0, %v71_v3  ;;  %1364 = vmatprep.subr.msk.bf16.mxu1 %vm121_vm0, %v71_v3  ;;  %v123_v12 = vsel %vm121_vm0, %v71_v3, 0  ;;  %v63_v14 = vpack.c.bf16 %v41_v11, %v40_v10  ;;  %v26_v15 = vld [vmem:[%s2508_s0 + $0x20] sm:$0xff]  ;;  %v27_v16 = vld [vmem:[%s2508_s0 + $0x28] sm:$0xff]  ;;  %v28_v20 = vld [vmem:[%s2508_s0 + $0x30] sm:$0xff] }
   0x5   :  { %1260 = vmatpush3.bf16.msra.mxu0 %v123_v12  ;;  %1362 = vmatpush3.bf16.msra.mxu1 %v123_v12  ;;  %v56_v17 = vpack.c.bf16 %v27_v16, %v26_v15  ;;  %v42_v18 = vld [vmem:[%s2508_s0 + $0xa0] sm:$0xff]  ;;  %v43_v19 = vld [vmem:[%s2508_s0 + $0xa8] sm:$0xff]  ;;  %v29_v21 = vld [vmem:[%s2508_s0 + $0x38] sm:$0xff]  ;;  %v1368_v12 = vmov 1065369472  }
   0x6   :  { %1261 = vmatprep.mubr.msk.bf16.mxu0 %vm72_vm1, %v54_v4  ;;  %1277 = vmatprep.mubr.msk.bf16.mxu1 %vm72_vm1, %v62_v8  ;;  %v64_v22 = vpack.c.bf16 %v43_v19, %v42_v18  ;;  %v30_v23 = vld [vmem:[%s2508_s0 + $0x40] sm:$0xff]  ;;  %v44_v24 = vld [vmem:[%s2508_s0 + $0xb0] sm:$0xff]  ;;  %v45_v25 = vld [vmem:[%s2508_s0 + $0xb8] sm:$0xff]  ;;  %v57_v29 = vpack.c.bf16 %v29_v21, %v28_v20 }
   0x7   :  { %v31_v26 = vld [vmem:[%s2508_s0 + $0x48] sm:$0xff]  ;;  %v46_v27 = vld [vmem:[%s2508_s0 + $0xc0] sm:$0xff]  ;;  %v65_v30 = vpack.c.bf16 %v45_v25, %v44_v24  ;;  %v32_v39 = vld [vmem:[%s2508_s0 + $0x50] sm:$0xff] }
   0x8   :  { %1262 = vmatmul.mubr.msk.bf16.vlgmr.msra.gmra.mrb[0].mxu0 %vm72_vm1, %v55_v13  ;;  %1278 = vmatmul.mubr.msk.bf16.vlgmr.msra.gmra.mrb[0].mxu1 %vm72_vm1, %v63_v14  ;;  %v47_v28 = vld [vmem:[%s2508_s0 + $0xc8] sm:$0xff]  ;;  %v302_v31 = vld [vmem:[%s2509_s3] sm:$0xff]  ;;  %v58_v34 = vpack.c.bf16 %v31_v26, %v30_v23  ;;  %v33_v40 = vld [vmem:[%s2508_s0 + $0x58] sm:$0xff] }
   0x9   :  { %1265 = vmatprep.mubr.msk.bf16.mxu0 %vm72_vm1, %v56_v17  ;;  %1281 = vmatprep.mubr.msk.bf16.mxu1 %vm72_vm1, %v64_v22  ;;  %v303_v32 = vld [vmem:[%s2509_s3 + $0x8] sm:$0xff]  ;;  %v515_v33 = vld [vmem:[%s2510_s2] sm:$0xff]  ;;  %v66_v35 = vpack.c.bf16 %v47_v28, %v46_v27  ;;  %v48_v42 = vld [vmem:[%s2508_s0 + $0xd0] sm:$0xff]  ;;  %v59_v47 = vpack.c.bf16 %v33_v40, %v32_v39 }
   0xa   :  { %v304_v36 = vpack.c.bf16 %v303_v32, %v302_v31  ;;  %v516_v37 = vld [vmem:[%s2510_s2 + $0x8] sm:$0xff]  ;;  %v34_v41 = vld [vmem:[%s2508_s0 + $0x60] sm:$0xff]  ;;  %v49_v43 = vld [vmem:[%s2508_s0 + $0xd8] sm:$0xff] }
   0xb   :  { %v517_v38 = vpack.c.bf16 %v516_v37, %v515_v33  ;;  %v35_v44 = vld [vmem:[%s2508_s0 + $0x68] sm:$0xff]  ;;  %v50_v45 = vld [vmem:[%s2508_s0 + $0xe0] sm:$0xff]  ;;  %v67_v48 = vpack.c.bf16 %v49_v43, %v48_v42  ;;  %v36_v51 = vld [vmem:[%s2508_s0 + $0x70] sm:$0xff] }
   0xc   :  { %1293 = vmatprep.subr.bf16.mxu1 %v304_v36  ;;  %v51_v46 = vld [vmem:[%s2508_s0 + $0xe8] sm:$0xff]  ;;  %v60_v49 = vpack.c.bf16 %v35_v44, %v34_v41  ;;  %v37_v52 = vld [vmem:[%s2508_s0 + $0x78] sm:$0xff]  ;;  %v52_v53 = vld [vmem:[%s2508_s0 + $0xf0] sm:$0xff] }
   0xd   :  { %1327 = vmatprep.subr.bf16.mxu0 %v517_v38  ;;  %1294 = vmatpush3.bf16.msra.mxu1 %v304_v36  ;;  %v68_v50 = vpack.c.bf16 %v51_v46, %v50_v45  ;;  %v53_v54 = vld [vmem:[%s2508_s0 + $0xf8] sm:$0xff]  ;;  %v61_v55 = vpack.c.bf16 %v37_v52, %v36_v51  ;;  %s1367_s0 = smov 1  }
   0xe   :  { %1328 = vmatpush3.bf16.msra.mxu0 %v517_v38  ;;  %v69_v56 = vpack.c.bf16 %v53_v54, %v52_v53 }
  0x10   :  { %1266 = vmatmul.mubr.msk.bf16.gmra.mrb[4].mxu0 %vm72_vm1, %v57_v29  ;;  %1282 = vmatmul.mubr.msk.bf16.gmra.mrb[4].mxu1 %vm72_vm1, %v65_v30 }
  0x11   :  { %1269 = vmatprep.mubr.msk.bf16.mxu0 %vm72_vm1, %v58_v34  ;;  %1285 = vmatprep.mubr.msk.bf16.mxu1 %vm72_vm1, %v66_v35 }
  0x18   :  { %1270 = vmatmul.mubr.msk.bf16.gmra.mrb[8].mxu0 %vm72_vm1, %v59_v47  ;;  %1286 = vmatmul.mubr.msk.bf16.gmra.mrb[8].mxu1 %vm72_vm1, %v67_v48 }
  0x19   :  { %1273 = vmatprep.mubr.msk.bf16.mxu0 %vm72_vm1, %v60_v49  ;;  %1289 = vmatprep.mubr.msk.bf16.mxu1 %vm72_vm1, %v68_v50 }
  0x20   :  { %1274 = vmatmul.mubr.msk.bf16.gmra.mrb[12].mxu0 %vm72_vm1, %v61_v55  ;;  %1290 = vmatmul.mubr.msk.bf16.gmra.mrb[12].mxu1 %vm72_vm1, %v69_v56 }
  0xdb   :  { %v1263_v57 = vpop.f32.mrb[0].mxu0  ;;  %v1279_v58 = vpop.f32.mrb[0].mxu1 }
  0xdc   :  { %v159_v59 = vpop.f32.mrb[1].mxu0  ;;  %v1194_v60 = vpack.c.bf16 %v1279_v58, %v1279_v58  ;;  %v1178_v61 = vpack.c.bf16 %v1263_v57, %v1263_v57  ;;  %v223_v62 = vpop.f32.mrb[1].mxu1 }
  0xdd   :  { %v1176_v63 = vpack.c.bf16 %v159_v59, %v159_v59  ;;  %v1264_v0 = vpop.f32.mrb[2].mxu0  ;;  %v1192_v1 = vpack.c.bf16 %v223_v62, %v223_v62  ;;  %v1280_v2 = vpop.f32.mrb[2].mxu1 }
  0xde   :  { %v287_v3 = vpack.c.bf16 %v1264_v0, %v1263_v57  ;;  %v1179_v4 = vpack.c.bf16 %v1264_v0, %v1264_v0  ;;  %958 = vrot.lane.b32.xlu0 %v1194_v60, %s1367_s0  ;;  %875 = vst.msk [vmem:[%s2511_s4 + $0x48] sm:$0xf] %vm856_vm2, %v1194_v60  ;;  %926 = vrot.lane.b32.xlu1 %v1178_v61, %s1367_s0  ;;  %859 = vst.msk [vmem:[%s2511_s4 + $0x8] sm:$0xf] %vm856_vm2, %v1178_v61  ;;  %v162_v5 = vpop.f32.mrb[3].mxu0  ;;  %v226_v7 = vpop.f32.mrb[3].mxu1 }
  0xdf   :  { %v1541_v6 = vpack.c.bf16 %v1280_v2, %v1279_v58  ;;  %857 = vst.msk [vmem:[%s2511_s4] sm:$0xf] %vm856_vm2, %v1176_v63  ;;  %v286_v8 = vpack.c.bf16 %v162_v5, %v159_v59  ;;  %v1177_v9 = vpack.c.bf16 %v162_v5, %v162_v5  ;;  %873 = vst.msk [vmem:[%s2511_s4 + $0x40] sm:$0xf] %vm856_vm2, %v1192_v1 }
  0xe0   :  { %v1195_v10 = vpack.c.bf16 %v1280_v2, %v1280_v2  ;;  %v1551_v11 = vpack.c.bf16 %v226_v7, %v223_v62  ;;  %908 = vst.msk [vmem:[%s2511_s4 + $0x48] sm:$0xf] %vm889_vm3, %v1368_v12  ;;  %892 = vst.msk [vmem:[%s2511_s4 + $0x8] sm:$0xf] %vm889_vm3, %v1368_v12  ;;  %v1193_v13 = vpack.c.bf16 %v226_v7, %v226_v7 }
  0xe1   :  { %860 = vst.msk [vmem:[%s2511_s4 + $0xc] sm:$0xf] %vm856_vm2, %v1179_v4  ;;  %858 = vst.msk [vmem:[%s2511_s4 + $0x4] sm:$0xf] %vm856_vm2, %v1177_v9  ;;  %1295 = vmatprep.mubr.msk.bf16.mxu1 %vm305_vm4, %v286_v8  ;;  %1329 = vmatprep.mubr.msk.bf16.mxu0 %vm305_vm4, %v286_v8 }
  0xe2   :  { %890 = vst.msk [vmem:[%s2511_s4] sm:$0xf] %vm889_vm3, %v1368_v12  ;;  %906 = vst.msk [vmem:[%s2511_s4 + $0x40] sm:$0xf] %vm889_vm3, %v1368_v12  ;;  %922 = vrot.lane.b32.xlu0 %v1176_v63, %s1367_s0  ;;  %928 = vrot.lane.b32.xlu1 %v1179_v4, %s1367_s0 }
  0xe3   :  { %876 = vst.msk [vmem:[%s2511_s4 + $0x4c] sm:$0xf] %vm856_vm2, %v1195_v10  ;;  %874 = vst.msk [vmem:[%s2511_s4 + $0x44] sm:$0xf] %vm856_vm2, %v1193_v13  ;;  %1296 = vmatmul.mubr.msk.bf16.vlgmr.msra.gmra.mrb[16].mxu1 %vm305_vm4, %v287_v3  ;;  %1330 = vmatmul.mubr.msk.bf16.vlgmr.msra.gmra.mrb[16].mxu0 %vm305_vm4, %v287_v3  ;;  %v1267_v14 = vpop.f32.mrb[4].mxu0  ;;  %v1283_v15 = vpop.f32.mrb[4].mxu1 }
  0xe4   :  { %893 = vst.msk [vmem:[%s2511_s4 + $0xc] sm:$0xf] %vm889_vm3, %v1368_v12  ;;  %891 = vst.msk [vmem:[%s2511_s4 + $0x4] sm:$0xf] %vm889_vm3, %v1368_v12  ;;  %v1182_v16 = vpack.c.bf16 %v1267_v14, %v1267_v14  ;;  %v175_v17 = vpop.f32.mrb[5].mxu0  ;;  %v1615_v18 = vpack.c.bf16 %v1283_v15, %v1283_v15  ;;  %v239_v19 = vpop.f32.mrb[5].mxu1 }
  0xe5   :  { %909 = vst.msk [vmem:[%s2511_s4 + $0x4c] sm:$0xf] %vm889_vm3, %v1368_v12  ;;  %907 = vst.msk [vmem:[%s2511_s4 + $0x44] sm:$0xf] %vm889_vm3, %v1368_v12  ;;  %v1617_v20 = vpack.c.bf16 %v175_v17, %v175_v17  ;;  %v1268_v21 = vpop.f32.mrb[6].mxu0  ;;  %v1619_v22 = vpack.c.bf16 %v239_v19, %v239_v19  ;;  %v1284_v23 = vpop.f32.mrb[6].mxu1 }
  0xe6   :  { %863 = vst.msk [vmem:[%s2511_s4 + $0x18] sm:$0xf] %vm856_vm2, %v1182_v16  ;;  %v289_v24 = vpack.c.bf16 %v1268_v21, %v1267_v14  ;;  %v1183_v25 = vpack.c.bf16 %v1268_v21, %v1268_v21  ;;  %954 = vrot.lane.b32.xlu0 %v1192_v1, %s1367_s0  ;;  %960 = vrot.lane.b32.xlu1 %v1195_v10, %s1367_s0  ;;  %v178_v26 = vpop.f32.mrb[7].mxu0  ;;  %879 = vst.msk [vmem:[%s2511_s4 + $0x58] sm:$0xf] %vm856_vm2, %v1615_v18  ;;  %v242_v28 = vpop.f32.mrb[7].mxu1 }
  0xe7   :  { %v1632_v27 = vpack.c.bf16 %v1284_v23, %v1283_v15  ;;  %861 = vst.msk [vmem:[%s2511_s4 + $0x10] sm:$0xf] %vm856_vm2, %v1617_v20  ;;  %v288_v29 = vpack.c.bf16 %v178_v26, %v175_v17  ;;  %v1639_v30 = vpack.c.bf16 %v178_v26, %v178_v26  ;;  %877 = vst.msk [vmem:[%s2511_s4 + $0x50] sm:$0xf] %vm856_vm2, %v1619_v22 }
  0xe8   :  { %v1199_v31 = vpack.c.bf16 %v1284_v23, %v1284_v23  ;;  %v1646_v32 = vpack.c.bf16 %v242_v28, %v239_v19  ;;  %896 = vst.msk [vmem:[%s2511_s4 + $0x18] sm:$0xf] %vm889_vm3, %v1368_v12  ;;  %912 = vst.msk [vmem:[%s2511_s4 + $0x58] sm:$0xf] %vm889_vm3, %v1368_v12  ;;  %v1662_v33 = vpack.c.bf16 %v242_v28, %v242_v28 }
  0xe9   :  { %864 = vst.msk [vmem:[%s2511_s4 + $0x1c] sm:$0xf] %vm856_vm2, %v1183_v25  ;;  %862 = vst.msk [vmem:[%s2511_s4 + $0x14] sm:$0xf] %vm856_vm2, %v1639_v30  ;;  %1299 = vmatprep.mubr.msk.bf16.mxu1 %vm305_vm4, %v288_v29  ;;  %1333 = vmatprep.mubr.msk.bf16.mxu0 %vm305_vm4, %v288_v29 }
  0xea   :  { %894 = vst.msk [vmem:[%s2511_s4 + $0x10] sm:$0xf] %vm889_vm3, %v1368_v12  ;;  %910 = vst.msk [vmem:[%s2511_s4 + $0x50] sm:$0xf] %vm889_vm3, %v1368_v12  ;;  %956 = vrot.lane.b32.xlu1 %v1193_v13, %s1367_s0  ;;  %924 = vrot.lane.b32.xlu0 %v1177_v9, %s1367_s0 }
  0xeb   :  { %880 = vst.msk [vmem:[%s2511_s4 + $0x5c] sm:$0xf] %vm856_vm2, %v1199_v31  ;;  %878 = vst.msk [vmem:[%s2511_s4 + $0x54] sm:$0xf] %vm856_vm2, %v1662_v33  ;;  %1300 = vmatmul.mubr.msk.bf16.gmra.mrb[20].mxu1 %vm305_vm4, %v289_v24  ;;  %1334 = vmatmul.mubr.msk.bf16.gmra.mrb[20].mxu0 %vm305_vm4, %v289_v24  ;;  %v1271_v34 = vpop.f32.mrb[8].mxu0  ;;  %v1287_v35 = vpop.f32.mrb[8].mxu1 }
  0xec   :  { %897 = vst.msk [vmem:[%s2511_s4 + $0x1c] sm:$0xf] %vm889_vm3, %v1368_v12  ;;  %895 = vst.msk [vmem:[%s2511_s4 + $0x14] sm:$0xf] %vm889_vm3, %v1368_v12  ;;  %v1714_v36 = vpack.c.bf16 %v1271_v34, %v1271_v34  ;;  %v191_v37 = vpop.f32.mrb[9].mxu0  ;;  %v1716_v38 = vpack.c.bf16 %v1287_v35, %v1287_v35  ;;  %v255_v39 = vpop.f32.mrb[9].mxu1 }
  0xed   :  { %913 = vst.msk [vmem:[%s2511_s4 + $0x5c] sm:$0xf] %vm889_vm3, %v1368_v12  ;;  %911 = vst.msk [vmem:[%s2511_s4 + $0x54] sm:$0xf] %vm889_vm3, %v1368_v12  ;;  %v1718_v40 = vpack.c.bf16 %v191_v37, %v191_v37  ;;  %v1272_v41 = vpop.f32.mrb[10].mxu0  ;;  %v1720_v42 = vpack.c.bf16 %v255_v39, %v255_v39  ;;  %v1288_v43 = vpop.f32.mrb[10].mxu1 }
  0xee   :  { %867 = vst.msk [vmem:[%s2511_s4 + $0x28] sm:$0xf] %vm856_vm2, %v1714_v36  ;;  %v291_v44 = vpack.c.bf16 %v1272_v41, %v1271_v34  ;;  %v1727_v45 = vpack.c.bf16 %v1272_v41, %v1272_v41  ;;  %934 = vrot.lane.b32.xlu0 %v1182_v16, %s1367_s0  ;;  %936 = vrot.lane.b32.xlu1 %v1183_v25, %s1367_s0  ;;  %v194_v46 = vpop.f32.mrb[11].mxu0  ;;  %883 = vst.msk [vmem:[%s2511_s4 + $0x68] sm:$0xf] %vm856_vm2, %v1716_v38  ;;  %v258_v48 = vpop.f32.mrb[11].mxu1 }
  0xef   :  { %v1736_v47 = vpack.c.bf16 %v1288_v43, %v1287_v35  ;;  %865 = vst.msk [vmem:[%s2511_s4 + $0x20] sm:$0xf] %vm856_vm2, %v1718_v40  ;;  %v290_v49 = vpack.c.bf16 %v194_v46, %v191_v37  ;;  %v1743_v50 = vpack.c.bf16 %v194_v46, %v194_v46  ;;  %881 = vst.msk [vmem:[%s2511_s4 + $0x60] sm:$0xf] %vm856_vm2, %v1720_v42 }
  0xf0   :  { %v1750_v51 = vpack.c.bf16 %v1288_v43, %v1288_v43  ;;  %v1752_v52 = vpack.c.bf16 %v258_v48, %v255_v39  ;;  %900 = vst.msk [vmem:[%s2511_s4 + $0x28] sm:$0xf] %vm889_vm3, %v1368_v12  ;;  %916 = vst.msk [vmem:[%s2511_s4 + $0x68] sm:$0xf] %vm889_vm3, %v1368_v12  ;;  %v1769_v53 = vpack.c.bf16 %v258_v48, %v258_v48 }
  0xf1   :  { %868 = vst.msk [vmem:[%s2511_s4 + $0x2c] sm:$0xf] %vm856_vm2, %v1727_v45  ;;  %866 = vst.msk [vmem:[%s2511_s4 + $0x24] sm:$0xf] %vm856_vm2, %v1743_v50  ;;  %1303 = vmatprep.mubr.msk.bf16.mxu1 %vm305_vm4, %v290_v49  ;;  %1337 = vmatprep.mubr.msk.bf16.mxu0 %vm305_vm4, %v290_v49 }
  0xf2   :  { %898 = vst.msk [vmem:[%s2511_s4 + $0x20] sm:$0xf] %vm889_vm3, %v1368_v12  ;;  %914 = vst.msk [vmem:[%s2511_s4 + $0x60] sm:$0xf] %vm889_vm3, %v1368_v12  ;;  %966 = vrot.lane.b32.xlu0 %v1615_v18, %s1367_s0  ;;  %968 = vrot.lane.b32.xlu1 %v1199_v31, %s1367_s0 }
  0xf3   :  { %884 = vst.msk [vmem:[%s2511_s4 + $0x6c] sm:$0xf] %vm856_vm2, %v1750_v51  ;;  %882 = vst.msk [vmem:[%s2511_s4 + $0x64] sm:$0xf] %vm856_vm2, %v1769_v53  ;;  %1304 = vmatmul.mubr.msk.bf16.gmra.mrb[24].mxu1 %vm305_vm4, %v291_v44  ;;  %1338 = vmatmul.mubr.msk.bf16.gmra.mrb[24].mxu0 %vm305_vm4, %v291_v44  ;;  %v1275_v54 = vpop.f32.mrb[12].mxu0  ;;  %v1291_v55 = vpop.f32.mrb[12].mxu1 }
  0xf4   :  { %901 = vst.msk [vmem:[%s2511_s4 + $0x2c] sm:$0xf] %vm889_vm3, %v1368_v12  ;;  %899 = vst.msk [vmem:[%s2511_s4 + $0x24] sm:$0xf] %vm889_vm3, %v1368_v12  ;;  %v1190_v56 = vpack.c.bf16 %v1275_v54, %v1275_v54  ;;  %v207_v57 = vpop.f32.mrb[13].mxu0  ;;  %v1823_v58 = vpack.c.bf16 %v1291_v55, %v1291_v55  ;;  %v271_v59 = vpop.f32.mrb[13].mxu1 }
  0xf5   :  { %917 = vst.msk [vmem:[%s2511_s4 + $0x6c] sm:$0xf] %vm889_vm3, %v1368_v12  ;;  %915 = vst.msk [vmem:[%s2511_s4 + $0x64] sm:$0xf] %vm889_vm3, %v1368_v12  ;;  %v1188_v60 = vpack.c.bf16 %v207_v57, %v207_v57  ;;  %v1276_v61 = vpop.f32.mrb[14].mxu0  ;;  %v1204_v62 = vpack.c.bf16 %v271_v59, %v271_v59  ;;  %v1292_v63 = vpop.f32.mrb[14].mxu1 }
  0xf6   :  { %871 = vst.msk [vmem:[%s2511_s4 + $0x38] sm:$0xf] %vm856_vm2, %v1190_v56  ;;  %v293_v0 = vpack.c.bf16 %v1276_v61, %v1275_v54  ;;  %v1191_v1 = vpack.c.bf16 %v1276_v61, %v1276_v61  ;;  %930 = vrot.lane.b32.xlu0 %v1617_v20, %s1367_s0  ;;  %932 = vrot.lane.b32.xlu1 %v1639_v30, %s1367_s0  ;;  %v210_v2 = vpop.f32.mrb[15].mxu0  ;;  %887 = vst.msk [vmem:[%s2511_s4 + $0x78] sm:$0xf] %vm856_vm2, %v1823_v58  ;;  %v274_v4 = vpop.f32.mrb[15].mxu1 }
  0xf7   :  { %v301_v3 = vpack.c.bf16 %v1292_v63, %v1291_v55  ;;  %869 = vst.msk [vmem:[%s2511_s4 + $0x30] sm:$0xf] %vm856_vm2, %v1188_v60  ;;  %v292_v5 = vpack.c.bf16 %v210_v2, %v207_v57  ;;  %v1189_v7 = vpack.c.bf16 %v210_v2, %v210_v2  ;;  %885 = vst.msk [vmem:[%s2511_s4 + $0x70] sm:$0xf] %vm856_vm2, %v1204_v62 }
  0xf8   :  { %v1207_v8 = vpack.c.bf16 %v1292_v63, %v1292_v63  ;;  %v300_v9 = vpack.c.bf16 %v274_v4, %v271_v59  ;;  %904 = vst.msk [vmem:[%s2511_s4 + $0x38] sm:$0xf] %vm889_vm3, %v1368_v12  ;;  %920 = vst.msk [vmem:[%s2511_s4 + $0x78] sm:$0xf] %vm889_vm3, %v1368_v12  ;;  %v1205_v10 = vpack.c.bf16 %v274_v4, %v274_v4 }
  0xf9   :  { %872 = vst.msk [vmem:[%s2511_s4 + $0x3c] sm:$0xf] %vm856_vm2, %v1191_v1  ;;  %870 = vst.msk [vmem:[%s2511_s4 + $0x34] sm:$0xf] %vm856_vm2, %v1189_v7  ;;  %1307 = vmatprep.mubr.msk.bf16.mxu1 %vm305_vm4, %v292_v5  ;;  %1341 = vmatprep.mubr.msk.bf16.mxu0 %vm305_vm4, %v292_v5 }
  0xfa   :  { %902 = vst.msk [vmem:[%s2511_s4 + $0x30] sm:$0xf] %vm889_vm3, %v1368_v12  ;;  %918 = vst.msk [vmem:[%s2511_s4 + $0x70] sm:$0xf] %vm889_vm3, %v1368_v12  ;;  %962 = vrot.lane.b32.xlu0 %v1619_v22, %s1367_s0  ;;  %964 = vrot.lane.b32.xlu1 %v1662_v33, %s1367_s0 }
  0xfb   :  { %888 = vst.msk [vmem:[%s2511_s4 + $0x7c] sm:$0xf] %vm856_vm2, %v1207_v8  ;;  %886 = vst.msk [vmem:[%s2511_s4 + $0x74] sm:$0xf] %vm856_vm2, %v1205_v10  ;;  %1308 = vmatmul.mubr.msk.bf16.gmra.mrb[28].mxu1 %vm305_vm4, %v293_v0  ;;  %1342 = vmatmul.mubr.msk.bf16.gmra.mrb[28].mxu0 %vm305_vm4, %v293_v0 }
  0xfc   :  { %905 = vst.msk [vmem:[%s2511_s4 + $0x3c] sm:$0xf] %vm889_vm3, %v1368_v12  ;;  %903 = vst.msk [vmem:[%s2511_s4 + $0x34] sm:$0xf] %vm889_vm3, %v1368_v12  ;;  %1311 = vmatprep.mubr.msk.bf16.mxu1 %vm305_vm4, %v1551_v11  ;;  %1345 = vmatprep.mubr.msk.bf16.mxu0 %vm305_vm4, %v1551_v11 }
  0xfd   :  { %921 = vst.msk [vmem:[%s2511_s4 + $0x7c] sm:$0xf] %vm889_vm3, %v1368_v12  ;;  %919 = vst.msk [vmem:[%s2511_s4 + $0x74] sm:$0xf] %vm889_vm3, %v1368_v12 }
  0xfe   :  { %942 = vrot.lane.b32.xlu0 %v1714_v36, %s1367_s0  ;;  %944 = vrot.lane.b32.xlu1 %v1727_v45, %s1367_s0 }
 0x102   :  { %974 = vrot.lane.b32.xlu0 %v1716_v38, %s1367_s0  ;;  %976 = vrot.lane.b32.xlu1 %v1750_v51, %s1367_s0 }
 0x103   :  { %1312 = vmatmul.mubr.msk.bf16.gmra.mrb[32].mxu1 %vm305_vm4, %v1541_v6  ;;  %1346 = vmatmul.mubr.msk.bf16.gmra.mrb[32].mxu0 %vm305_vm4, %v1541_v6 }
 0x104   :  { %1315 = vmatprep.mubr.msk.bf16.mxu1 %vm305_vm4, %v1646_v32  ;;  %1349 = vmatprep.mubr.msk.bf16.mxu0 %vm305_vm4, %v1646_v32 }
 0x106   :  { %938 = vrot.lane.b32.xlu0 %v1718_v40, %s1367_s0  ;;  %940 = vrot.lane.b32.xlu1 %v1743_v50, %s1367_s0 }
 0x10a   :  { %970 = vrot.lane.b32.xlu0 %v1720_v42, %s1367_s0  ;;  %972 = vrot.lane.b32.xlu1 %v1769_v53, %s1367_s0 }
 0x10b   :  { %1316 = vmatmul.mubr.msk.bf16.gmra.mrb[36].mxu1 %vm305_vm4, %v1632_v27  ;;  %1350 = vmatmul.mubr.msk.bf16.gmra.mrb[36].mxu0 %vm305_vm4, %v1632_v27 }
 0x10c   :  { %1319 = vmatprep.mubr.msk.bf16.mxu1 %vm305_vm4, %v1752_v52  ;;  %1353 = vmatprep.mubr.msk.bf16.mxu0 %vm305_vm4, %v1752_v52 }
 0x10e   :  { %950 = vrot.lane.b32.xlu0 %v1190_v56, %s1367_s0  ;;  %952 = vrot.lane.b32.xlu1 %v1191_v1, %s1367_s0 }
 0x112   :  { %946 = vrot.lane.b32.xlu0 %v1188_v60, %s1367_s0  ;;  %948 = vrot.lane.b32.xlu1 %v1189_v7, %s1367_s0 }
 0x113   :  { %1320 = vmatmul.mubr.msk.bf16.gmra.mrb[40].mxu1 %vm305_vm4, %v1736_v47  ;;  %1354 = vmatmul.mubr.msk.bf16.gmra.mrb[40].mxu0 %vm305_vm4, %v1736_v47 }
 0x114   :  { %1323 = vmatprep.mubr.msk.bf16.mxu1 %vm305_vm4, %v300_v9  ;;  %1357 = vmatprep.mubr.msk.bf16.mxu0 %vm305_vm4, %v300_v9 }
 0x116   :  { %978 = vrot.lane.b32.xlu0 %v1204_v62, %s1367_s0  ;;  %980 = vrot.lane.b32.xlu1 %v1205_v10, %s1367_s0 }
 0x11a   :  { %982 = vrot.lane.b32.xlu0 %v1823_v58, %s1367_s0  ;;  %984 = vrot.lane.b32.xlu1 %v1207_v8, %s1367_s0 }
 0x11b   :  { %1324 = vmatmul.mubr.msk.bf16.gmra.mrb[44].mxu1 %vm305_vm4, %v301_v3  ;;  %1358 = vmatmul.mubr.msk.bf16.gmra.mrb[44].mxu0 %vm305_vm4, %v301_v3 }
 0x150   :  { %v959_v6 = vpop.permute.xlu0 %958  ;;  %v927_v11 = vpop.permute.xlu1 %926 }
 0x151   :  { %1037 = vst.msk [vmem:[%s2511_s4 + $0x48] sm:$0xf] %vm1018_vm5, %v959_v6  ;;  %1021 = vst.msk [vmem:[%s2511_s4 + $0x8] sm:$0xf] %vm1018_vm5, %v927_v11 }
 0x152   :  { %1070 = vst.msk [vmem:[%s2511_s4 + $0x48] sm:$0xf] %vm1051_vm6, %v1368_v12  ;;  %1054 = vst.msk [vmem:[%s2511_s4 + $0x8] sm:$0xf] %vm1051_vm6, %v1368_v12 }
 0x154   :  { %v923_v13 = vpop.permute.xlu0 %922  ;;  %v929_v14 = vpop.permute.xlu1 %928 }
 0x155   :  { %1019 = vst.msk [vmem:[%s2511_s4] sm:$0xf] %vm1018_vm5, %v923_v13  ;;  %1022 = vst.msk [vmem:[%s2511_s4 + $0xc] sm:$0xf] %vm1018_vm5, %v929_v14 }
 0x156   :  { %1052 = vst.msk [vmem:[%s2511_s4] sm:$0xf] %vm1051_vm6, %v1368_v12  ;;  %1055 = vst.msk [vmem:[%s2511_s4 + $0xc] sm:$0xf] %vm1051_vm6, %v1368_v12 }
 0x158   :  { %v955_v15 = vpop.permute.xlu0 %954  ;;  %v961_v16 = vpop.permute.xlu1 %960 }
 0x159   :  { %1035 = vst.msk [vmem:[%s2511_s4 + $0x40] sm:$0xf] %vm1018_vm5, %v955_v15  ;;  %1038 = vst.msk [vmem:[%s2511_s4 + $0x4c] sm:$0xf] %vm1018_vm5, %v961_v16 }
 0x15a   :  { %1068 = vst.msk [vmem:[%s2511_s4 + $0x40] sm:$0xf] %vm1051_vm6, %v1368_v12  ;;  %1071 = vst.msk [vmem:[%s2511_s4 + $0x4c] sm:$0xf] %vm1051_vm6, %v1368_v12 }
 0x15c   :  { %v957_v17 = vpop.permute.xlu1 %956  ;;  %v925_v18 = vpop.permute.xlu0 %924 }
 0x15d   :  { %1036 = vst.msk [vmem:[%s2511_s4 + $0x44] sm:$0xf] %vm1018_vm5, %v957_v17  ;;  %1020 = vst.msk [vmem:[%s2511_s4 + $0x4] sm:$0xf] %vm1018_vm5, %v925_v18 }
 0x15e   :  { %1069 = vst.msk [vmem:[%s2511_s4 + $0x44] sm:$0xf] %vm1051_vm6, %v1368_v12  ;;  %1053 = vst.msk [vmem:[%s2511_s4 + $0x4] sm:$0xf] %vm1051_vm6, %v1368_v12 }
 0x160   :  { %v935_v19 = vpop.permute.xlu0 %934  ;;  %v937_v20 = vpop.permute.xlu1 %936 }
 0x161   :  { %1025 = vst.msk [vmem:[%s2511_s4 + $0x18] sm:$0xf] %vm1018_vm5, %v935_v19  ;;  %1026 = vst.msk [vmem:[%s2511_s4 + $0x1c] sm:$0xf] %vm1018_vm5, %v937_v20 }
 0x162   :  { %1058 = vst.msk [vmem:[%s2511_s4 + $0x18] sm:$0xf] %vm1051_vm6, %v1368_v12  ;;  %1059 = vst.msk [vmem:[%s2511_s4 + $0x1c] sm:$0xf] %vm1051_vm6, %v1368_v12 }
 0x164   :  { %v967_v21 = vpop.permute.xlu0 %966  ;;  %v969_v22 = vpop.permute.xlu1 %968 }
 0x165   :  { %1041 = vst.msk [vmem:[%s2511_s4 + $0x58] sm:$0xf] %vm1018_vm5, %v967_v21  ;;  %1042 = vst.msk [vmem:[%s2511_s4 + $0x5c] sm:$0xf] %vm1018_vm5, %v969_v22 }
 0x166   :  { %1074 = vst.msk [vmem:[%s2511_s4 + $0x58] sm:$0xf] %vm1051_vm6, %v1368_v12  ;;  %1075 = vst.msk [vmem:[%s2511_s4 + $0x5c] sm:$0xf] %vm1051_vm6, %v1368_v12 }
 0x168   :  { %v931_v23 = vpop.permute.xlu0 %930  ;;  %v933_v24 = vpop.permute.xlu1 %932 }
 0x169   :  { %1023 = vst.msk [vmem:[%s2511_s4 + $0x10] sm:$0xf] %vm1018_vm5, %v931_v23  ;;  %1024 = vst.msk [vmem:[%s2511_s4 + $0x14] sm:$0xf] %vm1018_vm5, %v933_v24 }
 0x16a   :  { %1056 = vst.msk [vmem:[%s2511_s4 + $0x10] sm:$0xf] %vm1051_vm6, %v1368_v12  ;;  %1057 = vst.msk [vmem:[%s2511_s4 + $0x14] sm:$0xf] %vm1051_vm6, %v1368_v12 }
 0x16c   :  { %v963_v25 = vpop.permute.xlu0 %962  ;;  %v965_v26 = vpop.permute.xlu1 %964 }
 0x16d   :  { %1039 = vst.msk [vmem:[%s2511_s4 + $0x50] sm:$0xf] %vm1018_vm5, %v963_v25  ;;  %1040 = vst.msk [vmem:[%s2511_s4 + $0x54] sm:$0xf] %vm1018_vm5, %v965_v26 }
 0x16e   :  { %1072 = vst.msk [vmem:[%s2511_s4 + $0x50] sm:$0xf] %vm1051_vm6, %v1368_v12  ;;  %1073 = vst.msk [vmem:[%s2511_s4 + $0x54] sm:$0xf] %vm1051_vm6, %v1368_v12 }
 0x170   :  { %v943_v27 = vpop.permute.xlu0 %942  ;;  %v945_v28 = vpop.permute.xlu1 %944 }
 0x171   :  { %1029 = vst.msk [vmem:[%s2511_s4 + $0x28] sm:$0xf] %vm1018_vm5, %v943_v27  ;;  %1030 = vst.msk [vmem:[%s2511_s4 + $0x2c] sm:$0xf] %vm1018_vm5, %v945_v28 }
 0x172   :  { %1062 = vst.msk [vmem:[%s2511_s4 + $0x28] sm:$0xf] %vm1051_vm6, %v1368_v12  ;;  %1063 = vst.msk [vmem:[%s2511_s4 + $0x2c] sm:$0xf] %vm1051_vm6, %v1368_v12 }
 0x174   :  { %v975_v29 = vpop.permute.xlu0 %974  ;;  %v977_v30 = vpop.permute.xlu1 %976 }
 0x175   :  { %1045 = vst.msk [vmem:[%s2511_s4 + $0x68] sm:$0xf] %vm1018_vm5, %v975_v29  ;;  %1046 = vst.msk [vmem:[%s2511_s4 + $0x6c] sm:$0xf] %vm1018_vm5, %v977_v30 }
 0x176   :  { %1078 = vst.msk [vmem:[%s2511_s4 + $0x68] sm:$0xf] %vm1051_vm6, %v1368_v12  ;;  %1079 = vst.msk [vmem:[%s2511_s4 + $0x6c] sm:$0xf] %vm1051_vm6, %v1368_v12 }
 0x178   :  { %v939_v31 = vpop.permute.xlu0 %938  ;;  %v941_v32 = vpop.permute.xlu1 %940 }
 0x179   :  { %1027 = vst.msk [vmem:[%s2511_s4 + $0x20] sm:$0xf] %vm1018_vm5, %v939_v31  ;;  %1028 = vst.msk [vmem:[%s2511_s4 + $0x24] sm:$0xf] %vm1018_vm5, %v941_v32 }
 0x17a   :  { %1060 = vst.msk [vmem:[%s2511_s4 + $0x20] sm:$0xf] %vm1051_vm6, %v1368_v12  ;;  %1061 = vst.msk [vmem:[%s2511_s4 + $0x24] sm:$0xf] %vm1051_vm6, %v1368_v12 }
 0x17c   :  { %v971_v33 = vpop.permute.xlu0 %970  ;;  %v973_v34 = vpop.permute.xlu1 %972 }
 0x17d   :  { %1043 = vst.msk [vmem:[%s2511_s4 + $0x60] sm:$0xf] %vm1018_vm5, %v971_v33  ;;  %1044 = vst.msk [vmem:[%s2511_s4 + $0x64] sm:$0xf] %vm1018_vm5, %v973_v34 }
 0x17e   :  { %1076 = vst.msk [vmem:[%s2511_s4 + $0x60] sm:$0xf] %vm1051_vm6, %v1368_v12  ;;  %1077 = vst.msk [vmem:[%s2511_s4 + $0x64] sm:$0xf] %vm1051_vm6, %v1368_v12 }
 0x180   :  { %v951_v35 = vpop.permute.xlu0 %950  ;;  %v953_v36 = vpop.permute.xlu1 %952 }
 0x181   :  { %1033 = vst.msk [vmem:[%s2511_s4 + $0x38] sm:$0xf] %vm1018_vm5, %v951_v35  ;;  %1034 = vst.msk [vmem:[%s2511_s4 + $0x3c] sm:$0xf] %vm1018_vm5, %v953_v36 }
 0x182   :  { %1066 = vst.msk [vmem:[%s2511_s4 + $0x38] sm:$0xf] %vm1051_vm6, %v1368_v12  ;;  %1067 = vst.msk [vmem:[%s2511_s4 + $0x3c] sm:$0xf] %vm1051_vm6, %v1368_v12 }
 0x184   :  { %v947_v37 = vpop.permute.xlu0 %946  ;;  %v949_v38 = vpop.permute.xlu1 %948 }
 0x185   :  { %1031 = vst.msk [vmem:[%s2511_s4 + $0x30] sm:$0xf] %vm1018_vm5, %v947_v37  ;;  %1032 = vst.msk [vmem:[%s2511_s4 + $0x34] sm:$0xf] %vm1018_vm5, %v949_v38 }
 0x186   :  { %1064 = vst.msk [vmem:[%s2511_s4 + $0x30] sm:$0xf] %vm1051_vm6, %v1368_v12  ;;  %1065 = vst.msk [vmem:[%s2511_s4 + $0x34] sm:$0xf] %vm1051_vm6, %v1368_v12 }
 0x188   :  { %v979_v39 = vpop.permute.xlu0 %978  ;;  %v981_v40 = vpop.permute.xlu1 %980 }
 0x189   :  { %1047 = vst.msk [vmem:[%s2511_s4 + $0x70] sm:$0xf] %vm1018_vm5, %v979_v39  ;;  %1048 = vst.msk [vmem:[%s2511_s4 + $0x74] sm:$0xf] %vm1018_vm5, %v981_v40 }
 0x18a   :  { %1080 = vst.msk [vmem:[%s2511_s4 + $0x70] sm:$0xf] %vm1051_vm6, %v1368_v12  ;;  %1081 = vst.msk [vmem:[%s2511_s4 + $0x74] sm:$0xf] %vm1051_vm6, %v1368_v12 }
 0x18c   :  { %v983_v41 = vpop.permute.xlu0 %982  ;;  %v985_v42 = vpop.permute.xlu1 %984 }
 0x18d   :  { %1049 = vst.msk [vmem:[%s2511_s4 + $0x78] sm:$0xf] %vm1018_vm5, %v983_v41  ;;  %1050 = vst.msk [vmem:[%s2511_s4 + $0x7c] sm:$0xf] %vm1018_vm5, %v985_v42 }
 0x18e   :  { %1082 = vst.msk [vmem:[%s2511_s4 + $0x78] sm:$0xf] %vm1051_vm6, %v1368_v12  ;;  %1083 = vst.msk [vmem:[%s2511_s4 + $0x7c] sm:$0xf] %vm1051_vm6, %v1368_v12 }
 0x1b6   :  { %v1297_v43 = vpop.f32.mrb[16].mxu1  ;;  %v1331_v44 = vpop.f32.mrb[16].mxu0 }
 0x1b7   :  { %682 = vst.msk [vmem:[%s2512_s5 + $0x10] sm:$0xff] %vm679_vm7, %v1297_v43  ;;  %714 = vst.msk [vmem:[%s2513_s6 + $0x10] sm:$0xff] %vm679_vm7, %v1331_v44  ;;  %v388_v45 = vpop.f32.mrb[17].mxu1  ;;  %v552_v46 = vpop.f32.mrb[17].mxu0 }
 0x1b8   :  { %680 = vst.msk [vmem:[%s2512_s5] sm:$0xff] %vm679_vm7, %v388_v45  ;;  %712 = vst.msk [vmem:[%s2513_s6] sm:$0xff] %vm679_vm7, %v552_v46  ;;  %v1298_v12 = vpop.f32.mrb[18].mxu1  ;;  %v1332_v47 = vpop.f32.mrb[18].mxu0 }
 0x1b9   :  { %683 = vst.msk [vmem:[%s2512_s5 + $0x18] sm:$0xff] %vm679_vm7, %v1298_v12  ;;  %715 = vst.msk [vmem:[%s2513_s6 + $0x18] sm:$0xff] %vm679_vm7, %v1332_v47  ;;  %v391_v48 = vpop.f32.mrb[19].mxu1  ;;  %v555_v49 = vpop.f32.mrb[19].mxu0 }
 0x1ba   :  { %681 = vst.msk [vmem:[%s2512_s5 + $0x8] sm:$0xff] %vm679_vm7, %v391_v48  ;;  %713 = vst.msk [vmem:[%s2513_s6 + $0x8] sm:$0xff] %vm679_vm7, %v555_v49 }
 0x1be   :  { %v1301_v50 = vpop.f32.mrb[20].mxu1  ;;  %v1335_v51 = vpop.f32.mrb[20].mxu0 }
 0x1bf   :  { %686 = vst.msk [vmem:[%s2512_s5 + $0x30] sm:$0xff] %vm679_vm7, %v1301_v50  ;;  %718 = vst.msk [vmem:[%s2513_s6 + $0x30] sm:$0xff] %vm679_vm7, %v1335_v51  ;;  %v404_v52 = vpop.f32.mrb[21].mxu1  ;;  %v568_v53 = vpop.f32.mrb[21].mxu0 }
 0x1c0   :  { %684 = vst.msk [vmem:[%s2512_s5 + $0x20] sm:$0xff] %vm679_vm7, %v404_v52  ;;  %716 = vst.msk [vmem:[%s2513_s6 + $0x20] sm:$0xff] %vm679_vm7, %v568_v53  ;;  %v1302_v54 = vpop.f32.mrb[22].mxu1  ;;  %v1336_v55 = vpop.f32.mrb[22].mxu0 }
 0x1c1   :  { %687 = vst.msk [vmem:[%s2512_s5 + $0x38] sm:$0xff] %vm679_vm7, %v1302_v54  ;;  %719 = vst.msk [vmem:[%s2513_s6 + $0x38] sm:$0xff] %vm679_vm7, %v1336_v55  ;;  %v407_v56 = vpop.f32.mrb[23].mxu1  ;;  %v571_v57 = vpop.f32.mrb[23].mxu0 }
 0x1c2   :  { %685 = vst.msk [vmem:[%s2512_s5 + $0x28] sm:$0xff] %vm679_vm7, %v407_v56  ;;  %717 = vst.msk [vmem:[%s2513_s6 + $0x28] sm:$0xff] %vm679_vm7, %v571_v57 }
 0x1c6   :  { %v1305_v58 = vpop.f32.mrb[24].mxu1  ;;  %v1339_v59 = vpop.f32.mrb[24].mxu0 }
 0x1c7   :  { %690 = vst.msk [vmem:[%s2512_s5 + $0x50] sm:$0xff] %vm679_vm7, %v1305_v58  ;;  %722 = vst.msk [vmem:[%s2513_s6 + $0x50] sm:$0xff] %vm679_vm7, %v1339_v59  ;;  %v420_v60 = vpop.f32.mrb[25].mxu1  ;;  %v584_v61 = vpop.f32.mrb[25].mxu0 }
 0x1c8   :  { %688 = vst.msk [vmem:[%s2512_s5 + $0x40] sm:$0xff] %vm679_vm7, %v420_v60  ;;  %720 = vst.msk [vmem:[%s2513_s6 + $0x40] sm:$0xff] %vm679_vm7, %v584_v61  ;;  %v1306_v62 = vpop.f32.mrb[26].mxu1  ;;  %v1340_v63 = vpop.f32.mrb[26].mxu0 }
 0x1c9   :  { %691 = vst.msk [vmem:[%s2512_s5 + $0x58] sm:$0xff] %vm679_vm7, %v1306_v62  ;;  %723 = vst.msk [vmem:[%s2513_s6 + $0x58] sm:$0xff] %vm679_vm7, %v1340_v63  ;;  %v423_v0 = vpop.f32.mrb[27].mxu1  ;;  %v587_v1 = vpop.f32.mrb[27].mxu0 }
 0x1ca   :  { %689 = vst.msk [vmem:[%s2512_s5 + $0x48] sm:$0xff] %vm679_vm7, %v423_v0  ;;  %721 = vst.msk [vmem:[%s2513_s6 + $0x48] sm:$0xff] %vm679_vm7, %v587_v1 }
 0x1ce   :  { %v1309_v2 = vpop.f32.mrb[28].mxu1  ;;  %v1343_v3 = vpop.f32.mrb[28].mxu0 }
 0x1cf   :  { %694 = vst.msk [vmem:[%s2512_s5 + $0x70] sm:$0xff] %vm679_vm7, %v1309_v2  ;;  %726 = vst.msk [vmem:[%s2513_s6 + $0x70] sm:$0xff] %vm679_vm7, %v1343_v3  ;;  %v436_v4 = vpop.f32.mrb[29].mxu1  ;;  %v600_v5 = vpop.f32.mrb[29].mxu0 }
 0x1d0   :  { %692 = vst.msk [vmem:[%s2512_s5 + $0x60] sm:$0xff] %vm679_vm7, %v436_v4  ;;  %724 = vst.msk [vmem:[%s2513_s6 + $0x60] sm:$0xff] %vm679_vm7, %v600_v5  ;;  %v1310_v7 = vpop.f32.mrb[30].mxu1  ;;  %v1344_v8 = vpop.f32.mrb[30].mxu0 }
 0x1d1   :  { %695 = vst.msk [vmem:[%s2512_s5 + $0x78] sm:$0xff] %vm679_vm7, %v1310_v7  ;;  %727 = vst.msk [vmem:[%s2513_s6 + $0x78] sm:$0xff] %vm679_vm7, %v1344_v8  ;;  %v439_v9 = vpop.f32.mrb[31].mxu1  ;;  %v603_v10 = vpop.f32.mrb[31].mxu0 }
 0x1d2   :  { %693 = vst.msk [vmem:[%s2512_s5 + $0x68] sm:$0xff] %vm679_vm7, %v439_v9  ;;  %725 = vst.msk [vmem:[%s2513_s6 + $0x68] sm:$0xff] %vm679_vm7, %v603_v10 }
 0x1d6   :  { %v1313_v6 = vpop.f32.mrb[32].mxu1  ;;  %v1347_v11 = vpop.f32.mrb[32].mxu0 }
 0x1d7   :  { %698 = vst.msk [vmem:[%s2512_s5 + $0x90] sm:$0xff] %vm679_vm7, %v1313_v6  ;;  %730 = vst.msk [vmem:[%s2513_s6 + $0x90] sm:$0xff] %vm679_vm7, %v1347_v11  ;;  %v452_v13 = vpop.f32.mrb[33].mxu1  ;;  %v616_v14 = vpop.f32.mrb[33].mxu0 }
 0x1d8   :  { %696 = vst.msk [vmem:[%s2512_s5 + $0x80] sm:$0xff] %vm679_vm7, %v452_v13  ;;  %728 = vst.msk [vmem:[%s2513_s6 + $0x80] sm:$0xff] %vm679_vm7, %v616_v14  ;;  %v1314_v15 = vpop.f32.mrb[34].mxu1  ;;  %v1348_v16 = vpop.f32.mrb[34].mxu0 }
 0x1d9   :  { %699 = vst.msk [vmem:[%s2512_s5 + $0x98] sm:$0xff] %vm679_vm7, %v1314_v15  ;;  %731 = vst.msk [vmem:[%s2513_s6 + $0x98] sm:$0xff] %vm679_vm7, %v1348_v16  ;;  %v455_v17 = vpop.f32.mrb[35].mxu1  ;;  %v619_v18 = vpop.f32.mrb[35].mxu0 }
 0x1da   :  { %697 = vst.msk [vmem:[%s2512_s5 + $0x88] sm:$0xff] %vm679_vm7, %v455_v17  ;;  %729 = vst.msk [vmem:[%s2513_s6 + $0x88] sm:$0xff] %vm679_vm7, %v619_v18 }
 0x1de   :  { %v1317_v19 = vpop.f32.mrb[36].mxu1  ;;  %v1351_v20 = vpop.f32.mrb[36].mxu0 }
 0x1df   :  { %702 = vst.msk [vmem:[%s2512_s5 + $0xb0] sm:$0xff] %vm679_vm7, %v1317_v19  ;;  %734 = vst.msk [vmem:[%s2513_s6 + $0xb0] sm:$0xff] %vm679_vm7, %v1351_v20  ;;  %v468_v21 = vpop.f32.mrb[37].mxu1  ;;  %v632_v22 = vpop.f32.mrb[37].mxu0 }
 0x1e0   :  { %700 = vst.msk [vmem:[%s2512_s5 + $0xa0] sm:$0xff] %vm679_vm7, %v468_v21  ;;  %732 = vst.msk [vmem:[%s2513_s6 + $0xa0] sm:$0xff] %vm679_vm7, %v632_v22  ;;  %v1318_v23 = vpop.f32.mrb[38].mxu1  ;;  %v1352_v24 = vpop.f32.mrb[38].mxu0 }
 0x1e1   :  { %703 = vst.msk [vmem:[%s2512_s5 + $0xb8] sm:$0xff] %vm679_vm7, %v1318_v23  ;;  %735 = vst.msk [vmem:[%s2513_s6 + $0xb8] sm:$0xff] %vm679_vm7, %v1352_v24  ;;  %v471_v25 = vpop.f32.mrb[39].mxu1  ;;  %v635_v26 = vpop.f32.mrb[39].mxu0 }
 0x1e2   :  { %701 = vst.msk [vmem:[%s2512_s5 + $0xa8] sm:$0xff] %vm679_vm7, %v471_v25  ;;  %733 = vst.msk [vmem:[%s2513_s6 + $0xa8] sm:$0xff] %vm679_vm7, %v635_v26 }
 0x1e6   :  { %v1321_v27 = vpop.f32.mrb[40].mxu1  ;;  %v1355_v28 = vpop.f32.mrb[40].mxu0 }
 0x1e7   :  { %706 = vst.msk [vmem:[%s2512_s5 + $0xd0] sm:$0xff] %vm679_vm7, %v1321_v27  ;;  %738 = vst.msk [vmem:[%s2513_s6 + $0xd0] sm:$0xff] %vm679_vm7, %v1355_v28  ;;  %v484_v29 = vpop.f32.mrb[41].mxu1  ;;  %v648_v30 = vpop.f32.mrb[41].mxu0 }
 0x1e8   :  { %704 = vst.msk [vmem:[%s2512_s5 + $0xc0] sm:$0xff] %vm679_vm7, %v484_v29  ;;  %736 = vst.msk [vmem:[%s2513_s6 + $0xc0] sm:$0xff] %vm679_vm7, %v648_v30  ;;  %v1322_v31 = vpop.f32.mrb[42].mxu1  ;;  %v1356_v32 = vpop.f32.mrb[42].mxu0 }
 0x1e9   :  { %707 = vst.msk [vmem:[%s2512_s5 + $0xd8] sm:$0xff] %vm679_vm7, %v1322_v31  ;;  %739 = vst.msk [vmem:[%s2513_s6 + $0xd8] sm:$0xff] %vm679_vm7, %v1356_v32  ;;  %v487_v33 = vpop.f32.mrb[43].mxu1  ;;  %v651_v34 = vpop.f32.mrb[43].mxu0 }
 0x1ea   :  { %705 = vst.msk [vmem:[%s2512_s5 + $0xc8] sm:$0xff] %vm679_vm7, %v487_v33  ;;  %737 = vst.msk [vmem:[%s2513_s6 + $0xc8] sm:$0xff] %vm679_vm7, %v651_v34 }
 0x1ee   :  { %v1325_v35 = vpop.f32.mrb[44].mxu1  ;;  %v1359_v36 = vpop.f32.mrb[44].mxu0 }
 0x1ef   :  { %710 = vst.msk [vmem:[%s2512_s5 + $0xf0] sm:$0xff] %vm679_vm7, %v1325_v35  ;;  %742 = vst.msk [vmem:[%s2513_s6 + $0xf0] sm:$0xff] %vm679_vm7, %v1359_v36  ;;  %v500_v37 = vpop.f32.mrb[45].mxu1  ;;  %v664_v38 = vpop.f32.mrb[45].mxu0 }
 0x1f0   :  { %708 = vst.msk [vmem:[%s2512_s5 + $0xe0] sm:$0xff] %vm679_vm7, %v500_v37  ;;  %740 = vst.msk [vmem:[%s2513_s6 + $0xe0] sm:$0xff] %vm679_vm7, %v664_v38  ;;  %v1326_v39 = vpop.f32.mrb[46].mxu1  ;;  %v1360_v40 = vpop.f32.mrb[46].mxu0 }
 0x1f1   :  { %711 = vst.msk [vmem:[%s2512_s5 + $0xf8] sm:$0xff] %vm679_vm7, %v1326_v39  ;;  %743 = vst.msk [vmem:[%s2513_s6 + $0xf8] sm:$0xff] %vm679_vm7, %v1360_v40  ;;  %v503_v41 = vpop.f32.mrb[47].mxu1  ;;  %v667_v42 = vpop.f32.mrb[47].mxu0 }
 0x1f2   :  { %709 = vst.msk [vmem:[%s2512_s5 + $0xe8] sm:$0xff] %vm679_vm7, %v503_v41  ;;  %741 = vst.msk [vmem:[%s2513_s6 + $0xe8] sm:$0xff] %vm679_vm7, %v667_v42 }

</bundles_post_ra>
